<compile_context>
chip_gen: v7x
topology: tpu7x:2x2x1
jax: 0.10.0
libtpu: 0.0.40
codegen_flags: <defaults>
</compile_context>

<pallas_src>
import functools

import jax
import jax.numpy as jnp
import numpy as np
from jax.experimental import pallas as pl
from jax.experimental.pallas import tpu as pltpu

THRESHOLD = 4.0
SIGMA = 1.0
IGNORE_INDEX = 255


def _gstmse_kernel(cnt_ref, pred_ref, sim_ref, out_ref, *, threshold, sigma):
    i = pl.program_id(0)
    n_valid = cnt_ref[i]                  # number of non-ignored frames for sample i

    pred = pred_ref[0]                    # (C, Tp) compacted logits; cols >= n_valid are zero pad
    sim = sim_ref[0]                      # (C, Tp) compacted similarity index
    C, Tp = pred.shape

    col = jax.lax.broadcasted_iota(jnp.int32, (C, Tp), 1)
    valid_mask = col < n_valid            # frames kept by torch.where(gt != ignore_index)
    n_pairs = n_valid - 1                 # number of consecutive valid-frame pairs
    pair_mask = col < n_pairs

    # ---- log_softmax over time with a single exp pass ----
    # log_softmax(pred[:,1:]) - log_softmax(pred[:,:-1]) at pair column t equals
    # (pred[:,t+1] - pred[:,t]) - (LSE_{1..n-1} - LSE_{0..n-2}); the shared max cancels.
    m = jnp.max(jnp.where(valid_mask, pred, -1e30), axis=1, keepdims=True)      # (C, 1)
    e = jnp.where(valid_mask, jnp.exp(pred - m), 0.0)                           # exp ONCE
    s_all = jnp.sum(e, axis=1, keepdims=True)                                   # frames 0..n-1
    e_first = e[:, 0:1]                                                         # frame 0
    e_last = jnp.sum(jnp.where(col == n_pairs, e, 0.0), axis=1, keepdims=True)  # frame n-1
    s_a = jnp.maximum(s_all - e_first, 1e-30)     # window 1..n-1  -> log_softmax(pred[:, 1:])
    s_b = jnp.maximum(s_all - e_last, 1e-30)      # window 0..n-2  -> log_softmax(pred[:, :-1])
    delta = jnp.log(s_a) - jnp.log(s_b)           # per-class LSE difference, (C, 1)

    pred_nxt = pltpu.roll(pred, Tp - 1, 1)        # column t -> pred[:, t+1] (wrap cols are masked)
    diff = (pred_nxt - pred) - delta
    mse = jnp.minimum(diff * diff, threshold ** 2)                # square >= 0; only upper clamp
    mse_c = jnp.sum(jnp.where(pair_mask, mse, 0.0), axis=0, keepdims=True)      # (1, Tp)

    # Gaussian similarity weight: exp(-||sim[:, t+1] - sim[:, t]|| / (2 sigma^2))
    sim_nxt = pltpu.roll(sim, Tp - 1, 1)
    dsim = jnp.where(pair_mask, sim_nxt - sim, 0.0)
    norm = jnp.sqrt(jnp.sum(dsim * dsim, axis=0, keepdims=True))                # (1, Tp)
    gauss = jnp.exp(-norm / (2.0 * sigma ** 2))

    denom = (C * jnp.maximum(n_pairs, 1)).astype(jnp.float32)
    per_sample = jnp.sum(gauss * mse_c) / denom                   # torch.mean over (C, n-1)
    # Guard degenerate samples (<= 1 valid frame): contribute 0 instead of NaN/Inf.
    per_sample = jnp.where(n_pairs > 0, per_sample, 0.0)

    out_ref[...] = jnp.broadcast_to(per_sample, out_ref.shape).astype(out_ref.dtype)


def gaussian_similarity_tmse(preds, gts, sim_index, *, threshold=4.0, sigma=1.0,
                             ignore_index=255):
    N, C, T = preds.shape
    preds = preds.astype(jnp.float32)
    sim_index = sim_index.astype(jnp.float32)
    Tp = ((T + 127) // 128) * 128          # lane-align time axis; padding is masked in-kernel

    # --- glue: O(T) stable compaction of valid frames to the front of the (padded) time axis ---
    def compact(pred, sim, gt):
        valid = gt != ignore_index                               # (T,)
        cnt = jnp.sum(valid).astype(jnp.int32)
        dest = jnp.where(valid, jnp.cumsum(valid) - 1, Tp)       # invalid frames -> OOB, dropped
        z = jnp.zeros((C, Tp), jnp.float32)
        return (z.at[:, dest].set(pred, mode="drop"),
                z.at[:, dest].set(sim, mode="drop"),
                cnt)

    pred_c, sim_c, counts = jax.vmap(compact)(preds, sim_index, gts)

    kernel = functools.partial(_gstmse_kernel,
                               threshold=float(threshold), sigma=float(sigma))

    # NOTE: when C < 8 the sublanes are under-filled; packing several samples per block would
    # fill them, at the cost of per-sample segment reductions. Left out to keep the kernel simple.
    block = pl.BlockSpec((1, C, Tp), lambda i, cnt: (i, 0, 0))
    out = pl.pallas_call(
        kernel,
        out_shape=jax.ShapeDtypeStruct((N, 1, 128), jnp.float32),
        grid_spec=pltpu.PrefetchScalarGridSpec(
            num_scalar_prefetch=1,
            grid=(N,),
            in_specs=[block, block],
            out_specs=pl.BlockSpec((1, 1, 128), lambda i, cnt: (i, 0, 0)),
        ),
        compiler_params=pltpu.CompilerParams(
            dimension_semantics=("parallel",)),
    )(counts, pred_c, sim_c)
    return jnp.mean(out[:, 0, 0])          # total_loss / batch_size


def _reference(preds, gts, sims, threshold=4.0, sigma=1.0, ignore_index=255):
    """Pure numpy port of the PyTorch forward (handles dynamic shapes directly)."""
    total = 0.0
    for pred, gt, sim in zip(preds, gts, sims):
        keep = np.where(gt != ignore_index)[0]
        p = pred[:, keep]
        s = sim[:, keep]
        diff = s[:, 1:] - s[:, :-1]
        similarity = np.exp(-np.linalg.norm(diff, axis=0) / (2 * sigma ** 2))

        def lsm(x):  # log_softmax over axis=1 (time), as in the module (dim=1 of (C, T'))
            m = x.max(axis=1, keepdims=True)
            return x - m - np.log(np.exp(x - m).sum(axis=1, keepdims=True))

        loss = (lsm(p[:, 1:]) - lsm(p[:, :-1])) ** 2
        loss = np.clip(loss, 0.0, threshold ** 2)
        loss = similarity * loss
        total += loss.mean()
    return total / len(preds)


if __name__ == "__main__":
    key = jax.random.PRNGKey(0)
    N, C, T = 2, 4, 16
    k1, k2, k3 = jax.random.split(key, 3)
    preds = jax.random.normal(k1, (N, C, T), dtype=jnp.float32)
    sim_index = jax.random.normal(k2, (N, C, T), dtype=jnp.float32)
    gts = jax.random.randint(k3, (N, T), 0, C).astype(jnp.int32)
    # mark a few frames as ignored to exercise the ignore_index path
    gts = gts.at[0, 3].set(IGNORE_INDEX)
    gts = gts.at[1, 0].set(IGNORE_INDEX)
    gts = gts.at[1, 10].set(IGNORE_INDEX)

    loss = gaussian_similarity_tmse(preds, gts, sim_index,
                                    threshold=THRESHOLD, sigma=SIGMA,
                                    ignore_index=IGNORE_INDEX)
    loss = jax.block_until_ready(loss)

    ref = _reference(np.asarray(preds), np.asarray(gts), np.asarray(sim_index),
                     threshold=THRESHOLD, sigma=SIGMA, ignore_index=IGNORE_INDEX)
    assert np.allclose(float(loss), ref, rtol=1e-4, atol=1e-5), (float(loss), ref)
    print("KERNEL_OK")
</pallas_src>

<mosaic_0001>
module attributes {stable_mosaic.version = 11 : i64} {
  func.func @_gstmse_kernel(%arg0: i32, %arg1: memref<2xi32, #tpu.memory_space<smem>>, %arg2: memref<1x4x128xf32, #tpu.memory_space<vmem>>, %arg3: memref<1x4x128xf32, #tpu.memory_space<vmem>>, %arg4: memref<1x1x128xf32, #tpu.memory_space<vmem>>) attributes {dimension_semantics = [#tpu.dimension_semantics<parallel>], iteration_bounds = array<i64: 2>, scalar_prefetch = 1 : i64, scratch_operands = 0 : i64, tpu.core_type = #tpu.core_type<tc>, window_params = [{transform_indices = @transform_0, window_bounds = array<i64: 1, 4, 128>}, {transform_indices = @transform_1, window_bounds = array<i64: 1, 4, 128>}, {transform_indices = @transform_2, window_bounds = array<i64: 1, 1, 128>}]} {
    %0 = arith.index_cast %arg0 : i32 to index
    %1 = memref.load %arg1[%0] : memref<2xi32, #tpu.memory_space<smem>>
    %c0 = arith.constant 0 : index
    %c0_0 = arith.constant 0 : index
    %c0_1 = arith.constant 0 : index
    %2 = vector.load %arg2[%c0, %c0_0, %c0_1] : memref<1x4x128xf32, #tpu.memory_space<vmem>>, vector<1x4x128xf32>
    %3 = vector.shape_cast %2 : vector<1x4x128xf32> to vector<4x128xf32>
    %c0_2 = arith.constant 0 : index
    %c0_3 = arith.constant 0 : index
    %c0_4 = arith.constant 0 : index
    %4 = vector.load %arg3[%c0_2, %c0_3, %c0_4] : memref<1x4x128xf32, #tpu.memory_space<vmem>>, vector<1x4x128xf32>
    %5 = vector.shape_cast %4 : vector<1x4x128xf32> to vector<4x128xf32>
    %6 = tpu.iota {dimensions = array<i32: 1>} : vector<4x128xi32>
    %7 = vector.broadcast %1 : i32 to vector<4x128xi32>
    %8 = arith.cmpi slt, %6, %7 : vector<4x128xi32>
    %c1_i32 = arith.constant 1 : i32
    %9 = arith.subi %1, %c1_i32 : i32
    %10 = vector.broadcast %9 : i32 to vector<4x128xi32>
    %11 = arith.cmpi slt, %6, %10 : vector<4x128xi32>
    %cst = arith.constant -1.000000e+30 : f32
    %12 = vector.broadcast %cst : f32 to vector<4x128xf32>
    %13 = arith.select %8, %3, %12 : vector<4x128xi1>, vector<4x128xf32>
    %cst_5 = arith.constant dense<0xFF800000> : vector<4xf32>
    %14 = vector.multi_reduction <maximumf>, %13, %cst_5 [1] : vector<4x128xf32> to vector<4xf32>
    %15 = vector.shape_cast %14 : vector<4xf32> to vector<4x1xf32>
    %16 = vector.broadcast %15 : vector<4x1xf32> to vector<4x128xf32>
    %17 = arith.subf %3, %16 : vector<4x128xf32>
    %18 = math.exp %17 : vector<4x128xf32>
    %cst_6 = arith.constant 0.000000e+00 : f32
    %19 = vector.broadcast %cst_6 : f32 to vector<4x128xf32>
    %20 = arith.select %8, %18, %19 : vector<4x128xi1>, vector<4x128xf32>
    %cst_7 = arith.constant dense<0.000000e+00> : vector<4xf32>
    %21 = vector.multi_reduction <add>, %20, %cst_7 [1] : vector<4x128xf32> to vector<4xf32>
    %22 = vector.shape_cast %21 : vector<4xf32> to vector<4x1xf32>
    %23 = vector.extract_strided_slice %20 {offsets = [0, 0], sizes = [4, 1], strides = [1, 1]} : vector<4x128xf32> to vector<4x1xf32>
    %24 = vector.broadcast %9 : i32 to vector<4x128xi32>
    %25 = arith.cmpi eq, %6, %24 : vector<4x128xi32>
    %cst_8 = arith.constant 0.000000e+00 : f32
    %26 = vector.broadcast %cst_8 : f32 to vector<4x128xf32>
    %27 = arith.select %25, %20, %26 : vector<4x128xi1>, vector<4x128xf32>
    %cst_9 = arith.constant dense<0.000000e+00> : vector<4xf32>
    %28 = vector.multi_reduction <add>, %27, %cst_9 [1] : vector<4x128xf32> to vector<4xf32>
    %29 = vector.shape_cast %28 : vector<4xf32> to vector<4x1xf32>
    %30 = arith.subf %22, %23 : vector<4x1xf32>
    %cst_10 = arith.constant 1.000000e-30 : f32
    %31 = vector.broadcast %cst_10 : f32 to vector<4x1xf32>
    %32 = arith.maximumf %30, %31 : vector<4x1xf32>
    %33 = arith.subf %22, %29 : vector<4x1xf32>
    %cst_11 = arith.constant 1.000000e-30 : f32
    %34 = vector.broadcast %cst_11 : f32 to vector<4x1xf32>
    %35 = arith.maximumf %33, %34 : vector<4x1xf32>
    %36 = math.log %32 : vector<4x1xf32>
    %37 = math.log %35 : vector<4x1xf32>
    %38 = arith.subf %36, %37 : vector<4x1xf32>
    %c127_i32 = arith.constant 127 : i32
    %39 = tpu.dynamic_rotate %3 by %c127_i32 dim 1 : vector<4x128xf32>, i32 -> vector<4x128xf32>
    %40 = arith.subf %39, %3 : vector<4x128xf32>
    %41 = vector.broadcast %38 : vector<4x1xf32> to vector<4x128xf32>
    %42 = arith.subf %40, %41 : vector<4x128xf32>
    %43 = arith.mulf %42, %42 : vector<4x128xf32>
    %cst_12 = arith.constant 1.600000e+01 : f32
    %44 = vector.broadcast %cst_12 : f32 to vector<4x128xf32>
    %45 = arith.minimumf %43, %44 : vector<4x128xf32>
    %cst_13 = arith.constant 0.000000e+00 : f32
    %46 = vector.broadcast %cst_13 : f32 to vector<4x128xf32>
    %47 = arith.select %11, %45, %46 : vector<4x128xi1>, vector<4x128xf32>
    %cst_14 = arith.constant dense<0.000000e+00> : vector<128xf32>
    %48 = vector.multi_reduction <add>, %47, %cst_14 [0] : vector<4x128xf32> to vector<128xf32>
    %49 = vector.shape_cast %48 : vector<128xf32> to vector<1x128xf32>
    %c127_i32_15 = arith.constant 127 : i32
    %50 = tpu.dynamic_rotate %5 by %c127_i32_15 dim 1 : vector<4x128xf32>, i32 -> vector<4x128xf32>
    %51 = arith.subf %50, %5 : vector<4x128xf32>
    %cst_16 = arith.constant 0.000000e+00 : f32
    %52 = vector.broadcast %cst_16 : f32 to vector<4x128xf32>
    %53 = arith.select %11, %51, %52 : vector<4x128xi1>, vector<4x128xf32>
    %54 = arith.mulf %53, %53 : vector<4x128xf32>
    %cst_17 = arith.constant dense<0.000000e+00> : vector<128xf32>
    %55 = vector.multi_reduction <add>, %54, %cst_17 [0] : vector<4x128xf32> to vector<128xf32>
    %56 = vector.shape_cast %55 : vector<128xf32> to vector<1x128xf32>
    %57 = math.sqrt %56 : vector<1x128xf32>
    %cst_18 = arith.constant 0.000000e+00 : f32
    %58 = vector.broadcast %cst_18 : f32 to vector<1x128xf32>
    %59 = arith.subf %58, %57 : vector<1x128xf32>
    %cst_19 = arith.constant 2.000000e+00 : f32
    %60 = vector.broadcast %cst_19 : f32 to vector<1x128xf32>
    %61 = arith.divf %59, %60 : vector<1x128xf32>
    %62 = math.exp %61 : vector<1x128xf32>
    %c1_i32_20 = arith.constant 1 : i32
    %63 = arith.maxsi %9, %c1_i32_20 : i32
    %c4_i32 = arith.constant 4 : i32
    %64 = arith.muli %c4_i32, %63 : i32
    %65 = arith.sitofp %64 : i32 to f32
    %66 = arith.mulf %62, %49 : vector<1x128xf32>
    %67 = vector.shape_cast %66 : vector<1x128xf32> to vector<1x1x128xf32>
    %cst_21 = arith.constant dense<0.000000e+00> : vector<1xf32>
    %68 = vector.multi_reduction <add>, %67, %cst_21 [1, 2] : vector<1x1x128xf32> to vector<1xf32>
    %69 = vector.shape_cast %68 : vector<1xf32> to vector<1x1x1xf32>
    %70 = vector.extract %69[0, 0, 0] : f32 from vector<1x1x1xf32>
    %71 = arith.divf %70, %65 : f32
    %c0_i32 = arith.constant 0 : i32
    %72 = arith.cmpi sgt, %9, %c0_i32 : i32
    %cst_22 = arith.constant 0.000000e+00 : f32
    %73 = arith.select %72, %71, %cst_22 : f32
    %74 = vector.broadcast %73 : f32 to vector<1x1x128xf32>
    %c0_23 = arith.constant 0 : index
    %c0_24 = arith.constant 0 : index
    %c0_25 = arith.constant 0 : index
    %75 = vector.load %arg4[%c0_23, %c0_24, %c0_25] : memref<1x1x128xf32, #tpu.memory_space<vmem>>, vector<1x1x128xf32>
    tpu.vector_store %arg4[%c0_23, %c0_24, %c0_25], %74 {strides = array<i32>} : memref<1x1x128xf32, #tpu.memory_space<vmem>>, vector<1x1x128xf32>,
    return
  }
  func.func @transform_0(%arg0: i32, %arg1: memref<2xi32, #tpu.memory_space<smem>>) -> (i32, i32, i32) {
    %c0_i32 = arith.constant 0 : i32
    %c0_i32_0 = arith.constant 0 : i32
    %c0_i32_1 = arith.constant 0 : i32
    return %arg0, %c0_i32, %c0_i32_0 : i32, i32, i32
  }
  func.func @transform_1(%arg0: i32, %arg1: memref<2xi32, #tpu.memory_space<smem>>) -> (i32, i32, i32) {
    %c0_i32 = arith.constant 0 : i32
    %c0_i32_0 = arith.constant 0 : i32
    %c0_i32_1 = arith.constant 0 : i32
    return %arg0, %c0_i32, %c0_i32_0 : i32, i32, i32
  }
  func.func @transform_2(%arg0: i32, %arg1: memref<2xi32, #tpu.memory_space<smem>>) -> (i32, i32, i32) {
    %c0_i32 = arith.constant 0 : i32
    %c0_i32_0 = arith.constant 0 : i32
    %c0_i32_1 = arith.constant 0 : i32
    return %arg0, %c0_i32, %c0_i32_0 : i32, i32, i32
  }
}

</mosaic_0001>

<bundles_post_ra>
// kernel: tpu_custom_call.1
= control target key start
LH: loop header
LB: loop body
LE: loop exit
PB: predicated region body
PF: predicated region fallthrough
CT: control target
= control target key end

     0   :  { %s909_s0 = inlined_call_operand.hbm [shape: s32[2], index: 0, kind: input, shape index: {}]   ;;  %s910_s1 = inlined_call_operand.hbm [shape: f32[2,4,128], index: 1, kind: input, shape index: {}]   ;;  %s911_s2 = inlined_call_operand.hbm [shape: f32[2,4,128], index: 2, kind: input, shape index: {}]   ;;  %s912_s3 = inlined_call_operand.hbm [shape: f32[2,1,128], index: 3, kind: output, shape index: {}]  }
   0x1   :  { %s491_s14 = scalar_lea.hbm %s909_s0, 16 }
   0x2   :  { %p492_p0 = scmp.ne.s32.totalorder %s909_s0, %s491_s14  ;;  %p495_p1 = scmp.lt.u32.totalorder %s491_s14, %s909_s0 }
   0x4   :  { %p497_p2 = pnand %p495_p1, %p492_p0 }
   0x6   :  { %500 = shalt.err (!%p497_p2)  }
   0x7   :  { %s635_s19 = smov [#allocation3]  }
   0x8   :  { %9 = dma.hbm_to_smem %s909_s0, 16, %s635_s19, [#allocation2] }
   0x9   :  { %605 = dma.done.wait [#allocation2], 16 }
   0xa   :  { %606 = vsyncadd [#allocation2], 4294967280 }
   0xb   :  { %11 = sfence }
   0xc   :  { %12 = vsyncpa [#allocation5], 0 }
   0xd   :  { %14 = vsyncpa [#allocation5 + $0x1], 0 }
   0xe   :  { %15 = vsyncpa [#allocation8], 0 }
   0xf   :  { %17 = vsyncpa [#allocation8 + $0x1], 0 }
  0x10   :  { %18 = vsyncpa [#allocation6], 0 }
  0x11   :  { %20 = vsyncpa [#allocation6 + $0x1], 0  ;;  %s673_s22 = smov 0   ;;  %s675_s23 = smov 0  }
  0x12   :  { %s677_s24 = smov 0   ;;  %s679_s25 = smov 0  }
  0x13 LB: > { %s694_s0 = sadd.s32 4294967295, %s633_s25   ;;  %s405_s26 = sadd.s32 4294967294, %s633_s25   ;;  %s633_s25 = sphi %s679_s25, %s933_s25   ;;  %s629_s24 = sphi %s677_s24, %s932_s24   ;;  %s625_s23 = sphi %s675_s23, %s931_s23   ;;  %s621_s22 = sphi %s673_s22, %s930_s22  }
  0x14   : > { %s698_s27 = sadd.s32 1, %s633_s25   ;;  %s33_s28 = sadd.s32 1, %s629_s24 }
  0x15   : > { %s30_s29 = ssub.s32 %s633_s25, %s698_s27  ;;  %p40_p3 = scmp.ne.s32.totalorder %s629_s24, %s625_s23 }
  0x16   : > { %p31_p4 = scmp.eq.s32.totalorder %s30_s29, 0  ;;  %p41_p5 = scmp.eq.s32.totalorder %s633_s25, 0 }
  0x17   : > { %p46_p6 = scmp.ne.s32.totalorder %s625_s23, %s621_s22  ;;  %p47_p7 = scmp.eq.s32.totalorder %s694_s0, 0 }
  0x18   : > { %s710_s30 = scalar_select %p31_p4, %s629_s24, %s33_s28  }
  0x19   : > { %p712_p8 = por %p41_p5, %p40_p3  ;;  %p716_p9 = por %p47_p7, %p46_p6 }
  0x1a   : > { %p96_p10 = scmp.eq.s32.totalorder %s694_s0, 1  ;;  %p102_p11 = scmp.eq.s32.totalorder %s405_s26, 1 }
  0x1b   : > { %s916_s5 = scalar_select %p716_p9, 1, 0 }
  0x1c   : > { %p441_p13 = scmp.lt.s32.totalorder %s633_s25, 2  ;;  %p723_p0 = por %p96_p10, %p40_p3 }
  0x1d   : > { %p727_p1 = por %p102_p11, %p46_p6  ;;  %s732_s8 = sand.u32 1, %s629_s24  }
  0x1e   : > { %s917_s6 = scalar_select %p723_p0, 1, 0 }
  0x1f   : > { %s918_s7 = scalar_select %p727_p1, 1, 0 }
  0x20   : > { %s409_s9 = sshll.u32 %s633_s25, 6  ;;  %s408_s10 = sshll.u32 %s732_s8, 2 }
  0x21   : > { %s741_s13 = scalar_lea.hbm %s910_s1, %s409_s9  ;;  %s126_s14 = scalar_lea.vmem [#allocation4], %s408_s10 }
  0x22   : > { %s133_s15 = sshll.u32 %s126_s14, 4  ;;  %p747_p2 = pnand %p441_p13, %p712_p8  ;;  %s751_s15 = int_to_ptr.vmem [resolvable:$true] %s133_s15 }
  0x23   : > { %s123_s17 = scalar_lea.sflag [#allocation5], %s732_s8  ;;  %s501_s18 = scalar_lea.hbm %s741_s13, 64 }
  0x24   : > { %p502_p5 = scmp.ne.s32.totalorder %s741_s13, %s501_s18  ;;  %p503_p6 = pneg %p747_p2 }
  0x25   : > { %s506_s21 = scalar_lea.hbm %s910_s1, 128  ;;  %p507_p8 = scmp.lt.u32.totalorder %s741_s13, %s910_s1 }
  0x26   : > { %p504_p7 = pnand %p503_p6, %p502_p5  ;;  %p508_p11 = scmp.lt.u32.totalorder %s506_s21, %s501_s18 }
  0x27   : > { %p510_p12 = scmp.lt.u32.totalorder %s501_s18, %s741_s13 }
  0x28   : > { %p505_p10 = pneg %p504_p7  ;;  %p509_p13 = por %p508_p11, %p507_p8 }
  0x2a   : > { %p511_p3 = por %p510_p12, %p509_p13 }
  0x2c   : > { %p512_p4 = pnand %p511_p3, %p505_p10 }
  0x2e   : > { %515 = shalt.err (!%p512_p4)
}
  0x2f   : > { %s516_s29 = scalar_lea.vmem %s751_s15, 64  ;;  %s636_s4 = smov [#allocation4]  }
  0x30   : > { %p517_p5 = scmp.ne.s32.totalorder %s751_s15, %s516_s29  ;;  %s521_s11 = sshll.u32 %s636_s4, 4  ;;  %s522_s11 = int_to_ptr.vmem [resolvable:$false] %s521_s11 }
  0x31   : > { %s523_s12 = scalar_lea.vmem %s522_s11, 128  ;;  %p524_p0 = scmp.lt.s32.totalorder %s751_s15, %s522_s11 }
  0x32   : > { %p519_p7 = pnand %p517_p5, %p503_p6  ;;  %p525_p8 = scmp.lt.s32.totalorder %s523_s12, %s516_s29 }
  0x34   : > { %p520_p1 = pneg %p519_p7  ;;  %p526_p11 = por %p525_p8, %p524_p0 }
  0x36   : > { %p527_p12 = pnand %p526_p11, %p520_p1 }
  0x38   : > { %530 = shalt.err (!%p527_p12)
}
  0x39   : > { %433 = dma.hbm_to_vmem [thread:$0]  (!%p747_p2), %s741_s13, 64, %s751_s15, %s123_s17  }
  0x3a   : > { %p920_p3 = scmp.lt.s32.totalorder %s633_s25, 3  ;;  %p921_p4 = scmp.ge.s32.totalorder %s633_s25, 1 }
  0x3b   : > { %s794_s20 = scalar_lea.hbm %s911_s2, %s409_s9  ;;  %s144_s21 = scalar_lea.vmem [#allocation7], %s408_s10 }
  0x3c   : > { %p785_p10 = pnand %p921_p4, %p920_p3  ;;  %s151_s26 = sshll.u32 %s144_s21, 4  ;;  %s152_s26 = int_to_ptr.vmem [resolvable:$true] %s151_s26 }
  0x3d   : > { %s141_s13 = scalar_lea.sflag [#allocation8], %s732_s8  ;;  %s531_s15 = scalar_lea.hbm %s794_s20, 64 }
  0x3e   : > { %s922_s14 = scalar_select %p785_p10, 1, 0 }
  0x3f   : > { %p532_p0 = scmp.ne.s32.totalorder %s794_s20, %s531_s15  ;;  %s536_s9 = scalar_lea.hbm %s911_s2, 128 }
  0x40   : > { %p537_p5 = scmp.lt.u32.totalorder %s794_s20, %s911_s2  ;;  %p538_p7 = scmp.lt.u32.totalorder %s536_s9, %s531_s15 }
  0x41   : > { %p534_p1 = pnand %p532_p0, %p503_p6  ;;  %p540_p11 = scmp.lt.u32.totalorder %s531_s15, %s794_s20 }
  0x42   : > { %p539_p8 = por %p538_p7, %p537_p5 }
  0x43   : > { %p535_p13 = pneg %p534_p1 }
  0x44   : > { %p541_p12 = por %p540_p11, %p539_p8 }
  0x46   : > { %p542_p3 = pnand %p541_p12, %p535_p13 }
  0x48   : > { %545 = shalt.err (!%p542_p3)
}
  0x49   : > { %s546_s8 = scalar_lea.vmem %s152_s26, 64  ;;  %s637_s10 = smov [#allocation7]  }
  0x4a   : > { %p547_p4 = scmp.ne.s32.totalorder %s152_s26, %s546_s8  ;;  %s551_s11 = sshll.u32 %s637_s10, 4  ;;  %s552_s11 = int_to_ptr.vmem [resolvable:$false] %s551_s11 }
  0x4b   : > { %s553_s12 = scalar_lea.vmem %s552_s11, 128  ;;  %p554_p9 = scmp.lt.s32.totalorder %s152_s26, %s552_s11 }
  0x4c   : > { %p549_p0 = pnand %p547_p4, %p503_p6  ;;  %p555_p10 = scmp.lt.s32.totalorder %s553_s12, %s546_s8 }
  0x4e   : > { %p550_p1 = pneg %p549_p0  ;;  %p556_p5 = por %p555_p10, %p554_p9 }
  0x50   : > { %p557_p7 = pnand %p556_p5, %p550_p1 }
  0x52   : > { %560 = shalt.err (!%p557_p7)
}
  0x53   : > { %436 = dma.hbm_to_vmem [thread:$0]  (!%p747_p2), %s794_s20, 64, %s152_s26, %s141_s13  }
  0x54   : > { %p923_p13 = scmp.ne.s32.totalorder %s922_s14, 0 }
  0x55   : > { %s821_s18 = sand.u32 (!%p923_p13), 1, %s625_s23   ;;  %p924_p6 = scmp.ne.s32.totalorder (!%p923_p13), %s916_s5, 0 }
  0x56   : > { %160 = sbr.rel (%p923_p13) target bundleno = 801 (0x321), region = 28  ;;  %s413_s19 = sshll.u32 (!%p923_p13), %s821_s18, 2 }
  0x57   : > { %s163_s21 = scalar_lea.sflag (!%p923_p13), [#allocation5], %s821_s18  ;;  %s166_s15 = scalar_lea.vmem (!%p923_p13), [#allocation4], %s413_s19 }
  0x5d   : > { %608 = dma.done.wait (%p924_p6), %s163_s21, 64  }
  0x5e   : > { %610 = vsyncadd (%p924_p6), %s163_s21, 4294967232  ;;  %s172_s16 = scalar_lea.sflag [#allocation8], %s821_s18  ;;  %s175_s20 = scalar_lea.vmem [#allocation7], %s413_s19 }
  0x5f   : > { %612 = dma.done.wait (%p924_p6), %s172_s16, 64  }
  0x60   : > { %614 = vsyncadd (%p924_p6), %s172_s16, 4294967232  ;;  %v203_v0 = vlaneseq  ;;  %s200_s14 = sld [smem:[#allocation3 + %s694_s0]]  ;;  %v835_v2 = vld [vmem:[%s166_s15] sm:$0xf]  ;;  %vm211_vm0 = vcmask 1043456   ;;  %s638_s26 = smov 127  }
  0x61   : > { %v202_v15 = vld [vmem:[%s175_s20] sm:$0xf]  ;;  %v639_v16 = vmov 0   ;;  %vm284_vm6 = vcmask 1040384   ;;  %s417_s4 = sshll.u32 %s694_s0, 4  ;;  %s199_s10 = scalar_lea.vmem [#allocation9], %s821_s18 }
  0x62   : > { %v204_v1 = vand.u32 127, %v203_v0  ;;  %478 = vset.pattern.permute.xlu0 %v639_v16  ;;  %s316_s11 = sshll.u32 %s199_s10, 4  ;;  %s865_s21 = scalar_lea.hbm %s912_s3, %s417_s4  ;;  %s867_s11 = int_to_ptr.vmem [resolvable:$true] %s316_s11 }
  0x63   : > { %s304_s15 = scalar_lea.sflag [#allocation6], %s821_s18  ;;  %s561_s16 = scalar_lea.vmem %s867_s11, 16 }
  0x64   : > { %p562_p10 = scmp.ne.s32.totalorder %s867_s11, %s561_s16  ;;  %p927_p8 = scmp.ne.s32.totalorder %s917_s6, 0 }
  0x65   : > { %s640_s0 = smov [#allocation9]  }
  0x66   : > { %v205_v3 = vstv %s200_s14  ;;  %s840_s5 = sadd.s32 4294967295, %s200_s14  ;;  %p563_p11 = pnand %p562_p10, %p927_p8 }
  0x67   : > { %vm206_vm1 = vcmp.lt.s32.totalorder %v204_v1, %v205_v3  ;;  %v208_v9 = vstv %s840_s5  ;;  %p279_p9 = scmp.gt.s32.totalorder %s840_s5, 1  ;;  %p299_p2 = scmp.gt.s32.totalorder %s840_s5, 0 }
  0x68   : > { %v210_v4 = vsel %vm206_vm1, %v835_v2, -1e+30  ;;  %vm222_vm2 = vcmp.eq.s32.totalorder %v204_v1, %v208_v9  ;;  %vm846_vm3 = vcmp.lt.s32.totalorder %v204_v1, %v208_v9  ;;  %p564_p12 = pneg %p563_p11  ;;  %s565_s20 = sshll.u32 %s640_s0, 4  ;;  %s566_s20 = int_to_ptr.vmem [resolvable:$false] %s565_s20 }
  0x69   : > { %v212_v5 = vsel %vm211_vm0, %v210_v4, -inf  ;;  %s280_s13 = scalar_select %p279_p9, %s840_s5, 1 }
  0x6a   : > { %213 = vmax.xlane.f32.xlu0 %v212_v5  ;;  %s567_s14 = scalar_lea.vmem %s566_s20, 32  ;;  %p568_p3 = scmp.lt.s32.totalorder %s867_s11, %s566_s20 }
  0x6b   : > { %s416_s17 = sshll.u32 %s280_s13, 2  ;;  %p569_p4 = scmp.lt.s32.totalorder %s567_s14, %s561_s16 }
  0x6c   : > { %s282_s28 = scvt.s32.f32 %s416_s17 }
  0x6d   : > { %p570_p0 = por %p569_p4, %p568_p3 }
  0x6e   : > { %v295_v1 = vstv %s282_s28 }
  0x6f   : > { %p571_p1 = pnand %p570_p0, %p564_p12 }
  0xf7   : > { %v214_v6 = vpop.xlane.xlu0 %213 }
  0xf8   : > { %v215_v7 = vsub.f32 %v835_v2, %v214_v6 }
  0xfa   : > { %v216_v8 = vmul.f32 1.442695, %v215_v7 }
  0xfc   : > { %479 = vpow2.f32 %v216_v8 }
 0x106   : > { %v480_v10 = vpop.eup %479 }
 0x107   : > { %v218_v11 = vsel %vm206_vm1, %v480_v10, 0.0 }
 0x108   : > { %v219_v12 = vsel %vm211_vm0, %v218_v11, 0.0  ;;  %v223_v13 = vsel %vm222_vm2, %v218_v11, 0.0 }
 0x109   : > { %220 = vadd.xlane.f32.xlu0 %v219_v12  ;;  %v224_v14 = vsel %vm211_vm0, %v223_v13, 0.0 }
 0x10a   : > { %225 = vadd.xlane.f32.xlu1 %v224_v14 }
 0x11b   : > { %255 = vrot.lane.b32.xlu1 %v202_v15, %s638_s26 }
 0x11f   : > { %236 = vrot.lane.b32.xlu1 %v835_v2, %s638_s26 }
 0x196   : > { %v221_v17 = vpop.xlane.xlu0 %220 }
 0x197   : > { %v227_v18 = vsub.f32 %v221_v17, %v218_v11  ;;  %v226_v19 = vpop.xlane.xlu1 %225 }
 0x198   : > { %v229_v20 = vsub.f32 %v221_v17, %v226_v19 }
 0x199   : > { %v228_v21 = vmax.f32 %v227_v18, 1e-30 }
 0x19a   : > { %v230_v22 = vmax.f32 %v229_v20, 1e-30 }
 0x19b   : > { %481 = vlog2.f32 %v228_v21  ;;  %v256_v28 = vpop.permute.xlu1 %255 }
 0x19c   : > { %483 = vlog2.f32 %v230_v22  ;;  %v257_v29 = vsub.f32 %v256_v28, %v202_v15 }
 0x19e   : > { %v258_v31 = vsel %vm846_vm3, %v257_v29, 0.0 }
 0x19f   : > { %v259_v32 = vmul.f32 %v258_v31, %v258_v31  ;;  %v237_v44 = vpop.permute.xlu1 %236 }
 0x1a0   : > { %v238_v46 = vsub.f32 %v237_v44, %v835_v2 }
 0x1a1   : > { %v260_v33 = vsel %vm211_vm0, %v259_v32, 0.0 }
 0x1a2   : > { %v261_v34 = vrot.slane %v260_v33, 4 }
 0x1a4   : > { %v262_v35 = vadd.f32 %v261_v34, %v260_v33 }
 0x1a5   : > { %v482_v23 = vpop.eup %481 }
 0x1a6   : > { %v484_v24 = vpop.eup %483  ;;  %v232_v25 = vmul.f32 0.6931472, %v482_v23  ;;  %v263_v36 = vrot.slane %v262_v35, 2 }
 0x1a7   : > { %v234_v26 = vmul.f32 0.6931472, %v484_v24 }
 0x1a8   : > { %v264_v37 = vadd.f32 %v263_v36, %v262_v35 }
 0x1a9   : > { %v235_v27 = vsub.f32 %v232_v25, %v234_v26 }
 0x1aa   : > { %v265_v38 = vrot.slane %v264_v37, 1 }
 0x1ab   : > { %241 = vperm.xlu0 %478, %v235_v27  }
 0x1ac   : > { %v266_v39 = vadd.f32 %v265_v38, %v264_v37 }
 0x1ae   : > { %485 = vrsqrt.f32 %v266_v39  ;;  %vm269_vm4 = vcmp.eq.f32.partialorder %v266_v39, inf  ;;  %v272_v42 = vand.u32 2147483648, %v266_v39  ;;  %vm271_vm5 = vcmp.eq.f32.partialorder %v266_v39, 0.0 }
 0x1b8   : > { %v486_v40 = vpop.eup %485 }
 0x1b9   : > { %v268_v41 = vmul.f32 %v486_v40, %v266_v39 }
 0x1bb   : > { %v270_v43 = vsel %vm269_vm4, %v266_v39, %v268_v41 }
 0x1bc   : > { %v273_v45 = vsel %vm271_vm5, %v272_v42, %v270_v43 }
 0x1bd   : > { %v274_v47 = vsub.f32 0.0, %v273_v45 }
 0x1bf   : > { %v276_v50 = vmul.f32 0.5, %v274_v47 }
 0x1c1   : > { %v277_v53 = vmul.f32 1.442695, %v276_v50 }
 0x1c3   : > { %487 = vpow2.f32 %v277_v53 }
 0x1c4   : > { %489 = vrcp.f32 %v295_v1 }
 0x1cd   : > { %v488_v62 = vpop.eup %487 }
 0x1ce   : > { %v490_v8 = vpop.eup %489 }
 0x22a   : > { %v242_v48 = vpop.permute.xlu0 %241 }
 0x22b   : > { %v244_v49 = vsub.f32 %v238_v46, %v242_v48 }
 0x22d   : > { %v245_v51 = vmul.f32 %v244_v49, %v244_v49 }
 0x22f   : > { %v246_v52 = vmin.f32 %v245_v51, 16.0 }
 0x231   : > { %v247_v54 = vsel %vm846_vm3, %v246_v52, 0.0 }
 0x232   : > { %v248_v55 = vsel %vm211_vm0, %v247_v54, 0.0 }
 0x233   : > { %v249_v56 = vrot.slane %v248_v55, 4 }
 0x235   : > { %v250_v57 = vadd.f32 %v249_v56, %v248_v55 }
 0x237   : > { %v251_v58 = vrot.slane %v250_v57, 2 }
 0x239   : > { %v252_v59 = vadd.f32 %v251_v58, %v250_v57 }
 0x23b   : > { %v253_v60 = vrot.slane %v252_v59, 1 }
 0x23d   : > { %v254_v61 = vadd.f32 %v253_v60, %v252_v59 }
 0x23f   : > { %v283_v63 = vmul.f32 %v488_v62, %v254_v61 }
 0x241   : > { %v285_v0 = vsel %vm284_vm6, %v283_v63, 0.0 }
 0x242   : > { %286 = vadd.xlane.f32.xlu1 %v285_v0 }
 0x2cf   : > { %v287_v2 = vpop.xlane.xlu1 %286 }
 0x2d0   : > { %v288_v3 = vrot.slane %v287_v2, 4 }
 0x2d2   : > { %v289_v4 = vadd.f32 %v288_v3, %v287_v2 }
 0x2d4   : > { %v290_v5 = vrot.slane %v289_v4, 2 }
 0x2d6   : > { %v291_v6 = vadd.f32 %v290_v5, %v289_v4 }
 0x2d8   : > { %v292_v7 = vrot.slane %v291_v6, 1 }
 0x2da   : > { %v293_v9 = vadd.f32 %v292_v7, %v291_v6 }
 0x2dc   : > { %420 = vpush %v293_v9 }
 0x2dd   : > { %422 = vpush %v490_v8 }
 0x30d   : > { %s421_s9 = spop %420 }
 0x30e   : > { %s423_s29 = spop %422 }
 0x30f   : > { %s298_s8 = smul.f32 %s423_s29, %s421_s9 }
 0x311   : > { %s935_s8 = smov (!%p299_p2, %s298_s8), 0.0 }
 0x312   : > { %v301_v10 = vstv %s935_s8 }
 0x313   : > { %302 = vst [vmem:[%s199_s10] sm:$0x1] %v301_v10 }
 0x314   : > { %574 = shalt.err (!%p571_p1)
}
 0x315   : > { %s575_s18 = scalar_lea.hbm %s865_s21, 16  ;;  %s579_s13 = scalar_lea.hbm %s912_s3, 32 }
 0x316   : > { %p576_p5 = scmp.ne.s32.totalorder %s865_s21, %s575_s18  ;;  %p580_p6 = scmp.lt.u32.totalorder %s865_s21, %s912_s3 }
 0x317   : > { %p581_p9 = scmp.lt.u32.totalorder %s579_s13, %s575_s18  ;;  %p583_p10 = scmp.lt.u32.totalorder %s575_s18, %s865_s21 }
 0x318   : > { %p577_p7 = pnand %p576_p5, %p927_p8 }
 0x319   : > { %p582_p2 = por %p581_p9, %p580_p6 }
 0x31a   : > { %p578_p13 = pneg %p577_p7 }
 0x31b   : > { %p584_p11 = por %p583_p10, %p582_p2 }
 0x31d   : > { %p585_p12 = pnand %p584_p11, %p578_p13 }
 0x31f   : > { %588 = shalt.err (!%p585_p12)
}
 0x320   : > { %428 = dma.vmem_to_hbm [thread:$0]  (%p927_p8), %s867_s11, 16, %s865_s21, %s304_s15  }
 0x321 PF: > { %s328_s9 = sand.u32 1, %s621_s22   ;;  %p928_p3 = scmp.ne.s32.totalorder %s918_s7, 0 }
 0x322   : > { %p929_p4 = scmp.ge.s32.totalorder %s633_s25, 2  ;;  %s329_s29 = scalar_lea.sflag [#allocation6], %s328_s9 }
 0x324   : > { %p438_p0 = pnand %p929_p4, %p928_p3 }
 0x326   : > { %616 = dma.done.wait (!%p438_p0), %s329_s29, 16  }
 0x327   : > { %618 = vsyncadd (!%p438_p0), %s329_s29, 4294967280  ;;  %p23_p1 = scmp.ge.s32.totalorder %s698_s27, 4   ;;  %s930_s22 = smov %s625_s23 }
 0x328   : > { %s931_s23 = smov %s629_s24  ;;  %s932_s24 = smov %s710_s30 }
 0x329   : > { %s933_s25 = smov %s698_s27  ;;  %25 = sbr.rel (!%p23_p1) target bundleno = 19 (0x13), region = 86 }
 0x330   :  { %333 = vsyncpa [#allocation5], 1 }
 0x331   :  { %335 = vsyncpa [#allocation5 + $0x1], 1 }
 0x332   :  { %336 = vsyncpa [#allocation8], 1 }
 0x333   :  { %338 = vsyncpa [#allocation8 + $0x1], 1 }
 0x334   :  { %339 = vsyncpa [#allocation6], 1 }
 0x335   :  { %341 = vsyncpa [#allocation6 + $0x1], 1 }

</bundles_post_ra>
